<compile_context>
chip_gen: v7x
topology: tpu7x:2x2x1
jax: 0.10.0
libtpu: 0.0.40
codegen_flags: <defaults>
</compile_context>

<pallas_src>
import jax
import jax.numpy as jnp
from jax import lax
from jax.experimental import pallas as pl
from jax.experimental.pallas import tpu as pltpu

LANE = 128


def _round_up(x, m):
    return (x + m - 1) // m * m


def _tpu_vmem_cap():
    try:
        return int(pltpu.get_tpu_info().vmem_capacity_bytes)
    except Exception:
        return 64 * 1024 * 1024  # conservative (v7x-sized) fallback


def _pick_batch_tile(batch, in_dim, hp, op, x_itemsize, w_itemsize, cache_h,
                     target=512):
    """Largest 16-row batch tile that fits the per-generation VMEM budget."""
    budget = int(_tpu_vmem_cap() * 0.70)              # headroom for Mosaic scratch
    resident = (in_dim * hp + hp * op) * w_itemsize + (2 * hp + op) * 4
    per_row = (in_dim * x_itemsize * 2                # streamed x tile (2 buffers)
               + op * x_itemsize * 2                  # streamed out tile
               + (hp * w_itemsize * 2 if cache_h else 0)  # streamed h cache
               + hp * 4 * 3 + op * 4)                 # f32 intermediates (h, hn, out)
    avail = max(budget - resident, per_row * 16)
    bt = min(target, avail // per_row, _round_up(batch, 16))
    return max(16, (int(bt) // 16) * 16)


# ----------------------------- kernels ---------------------------------------

def _partial_stats(h):
    """Pack [sum; sumsq; zeros] into an (8, hp) sublane-aligned block."""
    s = jnp.sum(h, axis=0, keepdims=True)
    ss = jnp.sum(h * h, axis=0, keepdims=True)
    row = lax.broadcasted_iota(jnp.int32, (8, h.shape[1]), 0)
    return jnp.where(row == 0, s, jnp.where(row == 1, ss, 0.0))


def _stats_kernel(x_ref, w1_ref, stat_ref):
    # Linear1 (no b1: a per-feature bias immediately followed by train-mode
    # BatchNorm is a mathematical no-op). bf16 operands, f32 accumulation.
    h = jnp.dot(x_ref[...].astype(w1_ref.dtype), w1_ref[...],
                preferred_element_type=jnp.float32)
    stat_ref[...] = _partial_stats(h)[None]


def _stats_cache_kernel(x_ref, w1_ref, h_ref, stat_ref):
    h = jnp.dot(x_ref[...].astype(w1_ref.dtype), w1_ref[...],
                preferred_element_type=jnp.float32)
    h_ref[...] = h.astype(h_ref.dtype)
    stat_ref[...] = _partial_stats(h)[None]


def _apply_recompute_kernel(x_ref, w1_ref, a_ref, c_ref, w2_ref, b2_ref, o_ref):
    h = jnp.dot(x_ref[...].astype(w1_ref.dtype), w1_ref[...],
                preferred_element_type=jnp.float32)
    hn = jnp.maximum(h * a_ref[...] + c_ref[...], 0.0)      # folded BN + ReLU
    out = jnp.dot(hn.astype(w2_ref.dtype), w2_ref[...],
                  preferred_element_type=jnp.float32)
    o_ref[...] = (out + b2_ref[...]).astype(o_ref.dtype)


def _apply_cached_kernel(h_ref, a_ref, c_ref, w2_ref, b2_ref, o_ref):
    h = h_ref[...].astype(jnp.float32)
    hn = jnp.maximum(h * a_ref[...] + c_ref[...], 0.0)
    out = jnp.dot(hn.astype(w2_ref.dtype), w2_ref[...],
                  preferred_element_type=jnp.float32)
    o_ref[...] = (out + b2_ref[...]).astype(o_ref.dtype)


# ----------------------------- wrappers ---------------------------------------

def mlp_head_prepare(w1, b1, gamma, beta, w2, b2, *, compute_dtype=jnp.bfloat16):
    """Pad to lane multiples and cast matmul weights ONCE (hoisted out of the
    per-call path).

    b1 is accepted for API parity but unused: a bias immediately before
    train-mode BatchNorm is exactly cancelled by the mean subtraction (this
    would NOT hold for eval-mode running statistics).
    """
    del b1
    in_dim, hidden = w1.shape
    out_dim = w2.shape[1]
    hp = _round_up(hidden, LANE)
    op = _round_up(out_dim, LANE)
    # Zero lane padding is exact: padded hidden columns get gamma=0 -> a=c=0
    # -> 0 through BN+ReLU, and padded w2 rows/cols are zero.
    # TODO(synk): if in_dim is user-controlled, pad it (and x) to a multiple of
    # 128 here as well so the MXU K dimension / x vloads are lane-dense.
    w1p = jnp.pad(w1, ((0, 0), (0, hp - hidden))).astype(compute_dtype)
    w2p = jnp.pad(w2, ((0, hp - hidden), (0, op - out_dim))).astype(compute_dtype)
    gammap = jnp.pad(gamma.astype(jnp.float32), (0, hp - hidden))
    betap = jnp.pad(beta.astype(jnp.float32), (0, hp - hidden))
    b2p = jnp.pad(b2.astype(jnp.float32), (0, op - out_dim)).reshape(1, op)
    return dict(w1=w1p, w2=w2p, gamma=gammap, beta=betap, b2=b2p,
                in_dim=in_dim, hidden=hidden, out_dim=out_dim, hp=hp, op=op)


def mlp_head_apply(x, p, *, eps=1e-5, batch_tile=None, cache_h=None):
    batch, in_dim = x.shape
    assert in_dim == p["in_dim"], "x feature dim does not match prepared params"
    hp, op, out_dim = p["hp"], p["op"], p["out_dim"]
    w1, w2, b2 = p["w1"], p["w2"], p["b2"]
    w_itemsize = w1.dtype.itemsize
    x_itemsize = x.dtype.itemsize

    if cache_h is None:
        # Recomputing Linear1 in pass B is cheaper for small K; caching h in
        # bf16 HBM wins once in_dim is large.
        cache_h = in_dim >= 512

    bt = batch_tile if batch_tile is not None else _pick_batch_tile(
        batch, in_dim, hp, op, x_itemsize, w_itemsize, cache_h)
    assert bt % 16 == 0, "batch tile must be a multiple of 16"

    padded_batch = _round_up(batch, bt)
    nb = padded_batch // bt
    if padded_batch != batch:
        # Zero-row padding is exact: with b1 folded away, padded rows give
        # h = 0 @ W1 = 0, so they add nothing to sum/sumsq (we divide by the
        # true batch below); their outputs are sliced off at the end.
        x = jnp.pad(x, ((0, padded_batch - batch), (0, 0)))

    vmem_limit = int(_tpu_vmem_cap() * 0.85)   # generation-aware scoped VMEM
    cparams = pltpu.CompilerParams(
        dimension_semantics=("parallel",),     # independent batch tiles ->
                                               # v7x megacore can split them
        vmem_limit_bytes=vmem_limit,
    )

    x_spec = pl.BlockSpec((bt, in_dim), lambda i: (i, 0))
    # TODO(synk): consider pipeline_mode=pl.Buffered(3) on x_spec if profiling
    # shows the stats pass is HBM-bound on x.
    stat_spec = pl.BlockSpec((1, 8, hp), lambda i: (i, 0, 0))
    o_spec = pl.BlockSpec((bt, op), lambda i: (i, 0))
    vec_h_spec = pl.BlockSpec((1, hp), lambda i: (0, 0))
    vec_o_spec = pl.BlockSpec((1, op), lambda i: (0, 0))

    def weight_spec(shape, single_buffer):
        # Block-invariant operand (constant index_map): never re-fetched, so a
        # single VMEM buffer suffices -> halves resident-weight VMEM.
        if single_buffer:
            try:
                return pl.BlockSpec(shape, lambda i: (0, 0),
                                    pipeline_mode=pl.Buffered(1))
            except (TypeError, ValueError):
                pass
        return pl.BlockSpec(shape, lambda i: (0, 0))

    def run(single_buffer):
        w1_spec = weight_spec((in_dim, hp), single_buffer)
        w2_spec = weight_spec((hp, op), single_buffer)

        # ---- pass A: Linear1 + per-tile BatchNorm partial statistics ------
        stats_shape = jax.ShapeDtypeStruct((nb, 8, hp), jnp.float32)
        cost_a = pl.CostEstimate(
            flops=2 * padded_batch * in_dim * hp,
            transcendentals=0,
            bytes_accessed=int(padded_batch * in_dim * x_itemsize
                               + in_dim * hp * w_itemsize + nb * 8 * hp * 4
                               + (padded_batch * hp * w_itemsize if cache_h else 0)))
        if cache_h:
            h_cache, partials = pl.pallas_call(
                _stats_cache_kernel,
                grid=(nb,),
                in_specs=[x_spec, w1_spec],
                out_specs=(pl.BlockSpec((bt, hp), lambda i: (i, 0)), stat_spec),
                out_shape=(jax.ShapeDtypeStruct((padded_batch, hp), w1.dtype),
                           stats_shape),
                compiler_params=cparams, cost_estimate=cost_a,
            )(x, w1)
        else:
            h_cache = None
            partials = pl.pallas_call(
                _stats_kernel,
                grid=(nb,),
                in_specs=[x_spec, w1_spec],
                out_specs=stat_spec,
                out_shape=stats_shape,
                compiler_params=cparams, cost_estimate=cost_a,
            )(x, w1)

        # ---- tiny XLA glue: reduce partials, fold BN into scale/shift ------
        tot = jnp.sum(partials, axis=0)                    # (8, hp)
        mean = tot[0] / batch
        # Single-pass (biased) variance, clamped for numerical safety.
        # TODO(synk): switch to a shifted/Welford scheme if activations can
        # have a large mean relative to their spread.
        var = jnp.maximum(tot[1] / batch - mean * mean, 0.0)
        inv_std = lax.rsqrt(var + jnp.float32(eps))
        a = (p["gamma"] * inv_std).reshape(1, hp)
        c = (p["beta"] - mean * p["gamma"] * inv_std).reshape(1, hp)

        # ---- pass B: folded BN + ReLU + Linear2 ----------------------------
        if cache_h:
            kern = _apply_cached_kernel
            in_specs = [pl.BlockSpec((bt, hp), lambda i: (i, 0)),
                        vec_h_spec, vec_h_spec, w2_spec, vec_o_spec]
            args = (h_cache, a, c, w2, b2)
            flops_b = 2 * padded_batch * hp * op
            bytes_b = (padded_batch * hp * w_itemsize + hp * op * w_itemsize
                       + padded_batch * op * x_itemsize)
        else:
            kern = _apply_recompute_kernel
            in_specs = [x_spec, w1_spec, vec_h_spec, vec_h_spec, w2_spec,
                        vec_o_spec]
            args = (x, w1, a, c, w2, b2)
            flops_b = 2 * padded_batch * (in_dim * hp + hp * op)
            bytes_b = (padded_batch * in_dim * x_itemsize
                       + (in_dim * hp + hp * op) * w_itemsize
                       + padded_batch * op * x_itemsize)

        out_padded = pl.pallas_call(
            kern,
            grid=(nb,),
            in_specs=in_specs,
            out_specs=o_spec,
            out_shape=jax.ShapeDtypeStruct((padded_batch, op), x.dtype),
            compiler_params=cparams,
            cost_estimate=pl.CostEstimate(flops=flops_b, transcendentals=0,
                                          bytes_accessed=int(bytes_b)),
        )(*args)
        return out_padded[:batch, :out_dim]

    try:
        return run(single_buffer=True)
    except Exception:  # conservative fallback if pl.Buffered(1) is unsupported
        return run(single_buffer=False)


def mlp_head(x, w1, b1, gamma, beta, w2, b2, *, eps=1e-5, batch_tile=None,
             cache_h=None, compute_dtype=jnp.bfloat16):
    """One-shot convenience wrapper (prefer mlp_head_prepare + mlp_head_apply
    in a loop so the padding/bf16 cast is not paid on every call)."""
    prepared = mlp_head_prepare(w1, b1, gamma, beta, w2, b2,
                                compute_dtype=compute_dtype)
    return mlp_head_apply(x, prepared, eps=eps, batch_tile=batch_tile,
                          cache_h=cache_h)


# ----------------------------- reference / test -------------------------------

def init_params(key, in_dim, hidden_dim, out_dim):
    """PyTorch-like init: Linear U(+-1/sqrt(fan_in)); BatchNorm gamma=1, beta=0."""
    k1, k2, k3, k4 = jax.random.split(key, 4)
    lim1 = 1.0 / jnp.sqrt(in_dim)
    lim2 = 1.0 / jnp.sqrt(hidden_dim)
    w1 = jax.random.uniform(k1, (in_dim, hidden_dim), jnp.float32, -lim1, lim1)
    b1 = jax.random.uniform(k2, (hidden_dim,), jnp.float32, -lim1, lim1)
    gamma = jnp.ones((hidden_dim,), jnp.float32)
    beta = jnp.zeros((hidden_dim,), jnp.float32)
    w2 = jax.random.uniform(k3, (hidden_dim, out_dim), jnp.float32, -lim2, lim2)
    b2 = jax.random.uniform(k4, (out_dim,), jnp.float32, -lim2, lim2)
    return w1, b1, gamma, beta, w2, b2


def mlp_head_ref(x, w1, b1, gamma, beta, w2, b2, eps=1e-5):
    h = x @ w1 + b1
    mean = h.mean(axis=0, keepdims=True)
    var = ((h - mean) ** 2).mean(axis=0, keepdims=True)   # biased, BN train mode
    h = (h - mean) / jnp.sqrt(var + eps) * gamma + beta
    h = jnp.maximum(h, 0.0)
    return h @ w2 + b2


if __name__ == "__main__":
    key = jax.random.PRNGKey(0)
    kx1, kx2, kp = jax.random.split(key, 3)

    # Small shapes consistent with MLPHead(in_dim, hidden_dim, out_dim);
    # hidden/out deliberately not lane multiples to exercise the padding path.
    in_dim, hidden_dim, out_dim = 48, 96, 40
    w1, b1, gamma, beta, w2, b2 = init_params(kp, in_dim, hidden_dim, out_dim)
    prepared = mlp_head_prepare(w1, b1, gamma, beta, w2, b2)  # pad + bf16, once

    # Case 1: batch divides the auto-picked tile; recompute-Linear1 path.
    batch1 = 32
    x1 = jax.random.normal(kx1, (batch1, in_dim), jnp.float32)
    ref1 = mlp_head_ref(x1, w1, b1, gamma, beta, w2, b2)
    out1 = mlp_head_apply(x1, prepared, cache_h=False)
    jax.block_until_ready(out1)
    assert out1.shape == (batch1, out_dim)
    assert jnp.allclose(out1, ref1, atol=5e-2, rtol=5e-2), "mismatch (recompute path)"

    # Case 2: ragged batch (36 -> padded to 48), multi-tile, cached-h path.
    batch2 = 36
    x2 = jax.random.normal(kx2, (batch2, in_dim), jnp.float32)
    ref2 = mlp_head_ref(x2, w1, b1, gamma, beta, w2, b2)
    out2 = mlp_head_apply(x2, prepared, batch_tile=16, cache_h=True)
    jax.block_until_ready(out2)
    assert out2.shape == (batch2, out_dim)
    assert jnp.allclose(out2, ref2, atol=5e-2, rtol=5e-2), "mismatch (cached-h path)"

    print("KERNEL_OK")
</pallas_src>

<mosaic_0001>
module attributes {stable_mosaic.version = 11 : i64} {
  func.func @_stats_kernel(%arg0: i32, %arg1: memref<32x48xf32, #tpu.memory_space<vmem>>, %arg2: memref<48x128xbf16, #tpu.memory_space<vmem>>, %arg3: memref<1x8x128xf32, #tpu.memory_space<vmem>>) attributes {dimension_semantics = [#tpu.dimension_semantics<parallel>], iteration_bounds = array<i64: 1>, scalar_prefetch = 0 : i64, scratch_operands = 0 : i64, tpu.core_type = #tpu.core_type<tc>, window_params = [{transform_indices = @transform_0, window_bounds = array<i64: 32, 48>}, {pipeline_mode = #tpu.pipeline_mode<synchronous>, transform_indices = @transform_1, window_bounds = array<i64: 48, 128>}, {transform_indices = @transform_2, window_bounds = array<i64: 1, 8, 128>}]} {
    %c0 = arith.constant 0 : index
    %c0_0 = arith.constant 0 : index
    %0 = vector.load %arg1[%c0, %c0_0] : memref<32x48xf32, #tpu.memory_space<vmem>>, vector<32x48xf32>
    %1 = arith.truncf %0 : vector<32x48xf32> to vector<32x48xbf16>
    %c0_1 = arith.constant 0 : index
    %c0_2 = arith.constant 0 : index
    %2 = vector.load %arg2[%c0_1, %c0_2] : memref<48x128xbf16, #tpu.memory_space<vmem>>, vector<48x128xbf16>
    %cst = arith.constant dense<0.000000e+00> : vector<32x128xf32>
    %3 = tpu.matmul %1, %2, %cst {dimension_numbers = #tpu.dot_dimension_numbers<[1], [0], [0], [1], [0, 0, 1, 1], [], []>} : vector<32x48xbf16>, vector<48x128xbf16>, vector<32x128xf32> -> vector<32x128xf32>
    %cst_3 = arith.constant dense<0.000000e+00> : vector<128xf32>
    %4 = vector.multi_reduction <add>, %3, %cst_3 [0] : vector<32x128xf32> to vector<128xf32>
    %5 = vector.shape_cast %4 : vector<128xf32> to vector<1x128xf32>
    %6 = arith.mulf %3, %3 : vector<32x128xf32>
    %cst_4 = arith.constant dense<0.000000e+00> : vector<128xf32>
    %7 = vector.multi_reduction <add>, %6, %cst_4 [0] : vector<32x128xf32> to vector<128xf32>
    %8 = vector.shape_cast %7 : vector<128xf32> to vector<1x128xf32>
    %9 = tpu.iota {dimensions = array<i32: 0>} : vector<8x128xi32>
    %c0_i32 = arith.constant 0 : i32
    %10 = vector.broadcast %c0_i32 : i32 to vector<8x128xi32>
    %11 = arith.cmpi eq, %9, %10 : vector<8x128xi32>
    %c1_i32 = arith.constant 1 : i32
    %12 = vector.broadcast %c1_i32 : i32 to vector<8x128xi32>
    %13 = arith.cmpi eq, %9, %12 : vector<8x128xi32>
    %cst_5 = arith.constant 0.000000e+00 : f32
    %14 = vector.shape_cast %8 : vector<1x128xf32> to vector<1x128xf32>
    %15 = vector.broadcast %14 : vector<1x128xf32> to vector<8x128xf32>
    %16 = vector.broadcast %cst_5 : f32 to vector<8x128xf32>
    %17 = arith.select %13, %15, %16 : vector<8x128xi1>, vector<8x128xf32>
    %18 = vector.shape_cast %5 : vector<1x128xf32> to vector<1x128xf32>
    %19 = vector.broadcast %18 : vector<1x128xf32> to vector<8x128xf32>
    %20 = arith.select %11, %19, %17 : vector<8x128xi1>, vector<8x128xf32>
    %21 = vector.shape_cast %20 : vector<8x128xf32> to vector<1x8x128xf32>
    %c0_6 = arith.constant 0 : index
    %c0_7 = arith.constant 0 : index
    %c0_8 = arith.constant 0 : index
    %22 = vector.load %arg3[%c0_6, %c0_7, %c0_8] : memref<1x8x128xf32, #tpu.memory_space<vmem>>, vector<1x8x128xf32>
    tpu.vector_store %arg3[%c0_6, %c0_7, %c0_8], %21 {strides = array<i32>} : memref<1x8x128xf32, #tpu.memory_space<vmem>>, vector<1x8x128xf32>,
    return
  }
  func.func @transform_0(%arg0: i32) -> (i32, i32) {
    %c0_i32 = arith.constant 0 : i32
    %c0_i32_0 = arith.constant 0 : i32
    return %arg0, %c0_i32 : i32, i32
  }
  func.func @transform_1(%arg0: i32) -> (i32, i32) {
    %c0_i32 = arith.constant 0 : i32
    %c0_i32_0 = arith.constant 0 : i32
    %c0_i32_1 = arith.constant 0 : i32
    return %c0_i32, %c0_i32_0 : i32, i32
  }
  func.func @transform_2(%arg0: i32) -> (i32, i32, i32) {
    %c0_i32 = arith.constant 0 : i32
    %c0_i32_0 = arith.constant 0 : i32
    %c0_i32_1 = arith.constant 0 : i32
    return %arg0, %c0_i32, %c0_i32_0 : i32, i32, i32
  }
}

module attributes {stable_mosaic.version = 11 : i64} {
  func.func @_stats_kernel(%arg0: i32, %arg1: memref<32x48xf32, #tpu.memory_space<vmem>>, %arg2: memref<48x128xbf16, #tpu.memory_space<vmem>>, %arg3: memref<1x8x128xf32, #tpu.memory_space<vmem>>) attributes {dimension_semantics = [#tpu.dimension_semantics<parallel>], iteration_bounds = array<i64: 1>, scalar_prefetch = 0 : i64, scratch_operands = 0 : i64, tpu.core_type = #tpu.core_type<tc>, window_params = [{transform_indices = @transform_0, window_bounds = array<i64: 32, 48>}, {pipeline_mode = #tpu.pipeline_mode<synchronous>, transform_indices = @transform_1, window_bounds = array<i64: 48, 128>}, {transform_indices = @transform_2, window_bounds = array<i64: 1, 8, 128>}]} {
    %c0 = arith.constant 0 : index
    %c0_0 = arith.constant 0 : index
    %0 = vector.load %arg1[%c0, %c0_0] : memref<32x48xf32, #tpu.memory_space<vmem>>, vector<32x48xf32>
    %1 = arith.truncf %0 : vector<32x48xf32> to vector<32x48xbf16>
    %c0_1 = arith.constant 0 : index
    %c0_2 = arith.constant 0 : index
    %2 = vector.load %arg2[%c0_1, %c0_2] : memref<48x128xbf16, #tpu.memory_space<vmem>>, vector<48x128xbf16>
    %cst = arith.constant dense<0.000000e+00> : vector<32x128xf32>
    %3 = tpu.matmul %1, %2, %cst {dimension_numbers = #tpu.dot_dimension_numbers<[1], [0], [0], [1], [0, 0, 1, 1], [], []>} : vector<32x48xbf16>, vector<48x128xbf16>, vector<32x128xf32> -> vector<32x128xf32>
    %cst_3 = arith.constant dense<0.000000e+00> : vector<128xf32>
    %4 = vector.multi_reduction <add>, %3, %cst_3 [0] : vector<32x128xf32> to vector<128xf32>
    %5 = vector.shape_cast %4 : vector<128xf32> to vector<1x128xf32>
    %6 = arith.mulf %3, %3 : vector<32x128xf32>
    %cst_4 = arith.constant dense<0.000000e+00> : vector<128xf32>
    %7 = vector.multi_reduction <add>, %6, %cst_4 [0] : vector<32x128xf32> to vector<128xf32>
    %8 = vector.shape_cast %7 : vector<128xf32> to vector<1x128xf32>
    %9 = tpu.iota {dimensions = array<i32: 0>} : vector<8x128xi32>
    %c0_i32 = arith.constant 0 : i32
    %10 = vector.broadcast %c0_i32 : i32 to vector<8x128xi32>
    %11 = arith.cmpi eq, %9, %10 : vector<8x128xi32>
    %c1_i32 = arith.constant 1 : i32
    %12 = vector.broadcast %c1_i32 : i32 to vector<8x128xi32>
    %13 = arith.cmpi eq, %9, %12 : vector<8x128xi32>
    %cst_5 = arith.constant 0.000000e+00 : f32
    %14 = vector.shape_cast %8 : vector<1x128xf32> to vector<1x128xf32>
    %15 = vector.broadcast %14 : vector<1x128xf32> to vector<8x128xf32>
    %16 = vector.broadcast %cst_5 : f32 to vector<8x128xf32>
    %17 = arith.select %13, %15, %16 : vector<8x128xi1>, vector<8x128xf32>
    %18 = vector.shape_cast %5 : vector<1x128xf32> to vector<1x128xf32>
    %19 = vector.broadcast %18 : vector<1x128xf32> to vector<8x128xf32>
    %20 = arith.select %11, %19, %17 : vector<8x128xi1>, vector<8x128xf32>
    %21 = vector.shape_cast %20 : vector<8x128xf32> to vector<1x8x128xf32>
    %c0_6 = arith.constant 0 : index
    %c0_7 = arith.constant 0 : index
    %c0_8 = arith.constant 0 : index
    %22 = vector.load %arg3[%c0_6, %c0_7, %c0_8] : memref<1x8x128xf32, #tpu.memory_space<vmem>>, vector<1x8x128xf32>
    tpu.vector_store %arg3[%c0_6, %c0_7, %c0_8], %21 {strides = array<i32>} : memref<1x8x128xf32, #tpu.memory_space<vmem>>, vector<1x8x128xf32>,
    return
  }
  func.func @transform_0(%arg0: i32) -> (i32, i32) {
    %c0_i32 = arith.constant 0 : i32
    %c0_i32_0 = arith.constant 0 : i32
    return %arg0, %c0_i32 : i32, i32
  }
  func.func @transform_1(%arg0: i32) -> (i32, i32) {
    %c0_i32 = arith.constant 0 : i32
    %c0_i32_0 = arith.constant 0 : i32
    %c0_i32_1 = arith.constant 0 : i32
    return %c0_i32, %c0_i32_0 : i32, i32
  }
  func.func @transform_2(%arg0: i32) -> (i32, i32, i32) {
    %c0_i32 = arith.constant 0 : i32
    %c0_i32_0 = arith.constant 0 : i32
    %c0_i32_1 = arith.constant 0 : i32
    return %arg0, %c0_i32, %c0_i32_0 : i32, i32, i32
  }
}

</mosaic_0001>

<bundles_post_ra>
// kernel: tpu_custom_call.1
= control target key start
LH: loop header
LB: loop body
LE: loop exit
PB: predicated region body
PF: predicated region fallthrough
CT: control target
= control target key end

     0   :  { %7 = vsyncpa [#allocation3], 0  ;;  %s332_s0 = inlined_call_operand.hbm [shape: f32[32,48], index: 0, kind: input, shape index: {}]   ;;  %s333_s1 = inlined_call_operand.hbm [shape: bf16[48,128], index: 1, kind: input, shape index: {}]   ;;  %s334_s2 = inlined_call_operand.hbm [shape: f32[1,8,128], index: 2, kind: output, shape index: {}]  }
   0x1   :  { %8 = vsyncpa [#allocation6], 0 }
   0x2   :  { %9 = vsyncpa [#allocation4], 0  ;;  %s274_s9 = smov [#allocation2]   ;;  %s202_s13 = scalar_lea.hbm %s332_s0, 512 }
   0x3   :  { %s15_s10 = sshll.u32 %s274_s9, 4  ;;  %p203_p0 = scmp.ne.s32.totalorder %s332_s0, %s202_s13  ;;  %s16_s10 = int_to_ptr.vmem [resolvable:$true] %s15_s10 }
   0x4   :  { %p206_p1 = scmp.lt.u32.totalorder %s202_s13, %s332_s0 }
   0x6   :  { %p208_p2 = pnand %p206_p1, %p203_p0 }
   0x8   :  { %211 = shalt.err (!%p208_p2)
}
   0x9   :  { %s212_s18 = scalar_lea.vmem %s16_s10, 512  ;;  %p217_p4 = scmp.lt.s32.totalorder %s16_s10, %s16_s10 }
   0xa   :  { %p213_p3 = scmp.ne.s32.totalorder %s16_s10, %s212_s18  ;;  %p218_p5 = scmp.lt.s32.totalorder %s212_s18, %s212_s18 }
   0xc   :  { %p219_p6 = por %p218_p5, %p217_p4 }
   0xe   :  { %p220_p7 = pnand %p219_p6, %p213_p3 }
  0x10   :  { %223 = shalt.err (!%p220_p7)
}
  0x11   :  { %s275_s19 = smov 128   ;;  %s276_s20 = smov 8  }
  0x12   :  { %21 = dma.hbm_to_vmem [thread:$0]  %s332_s0, 512, %s16_s10, [#allocation3], %s275_s19, %s275_s19, %s276_s20  }
  0x13   :  { %s277_s23 = smov [#allocation5]   ;;  %s224_s27 = scalar_lea.hbm %s333_s1, 384 }
  0x14   :  { %s27_s24 = sshll.u32 %s277_s23, 4  ;;  %p225_p8 = scmp.ne.s32.totalorder %s333_s1, %s224_s27  ;;  %s28_s24 = int_to_ptr.vmem [resolvable:$true] %s27_s24 }
  0x15   :  { %p228_p9 = scmp.lt.u32.totalorder %s224_s27, %s333_s1 }
  0x17   :  { %p230_p10 = pnand %p228_p9, %p225_p8 }
  0x19   :  { %233 = shalt.err (!%p230_p10)
}
  0x1a   :  { %s234_s4 = scalar_lea.vmem %s28_s24, 384  ;;  %p239_p12 = scmp.lt.s32.totalorder %s28_s24, %s28_s24 }
  0x1b   :  { %p235_p11 = scmp.ne.s32.totalorder %s28_s24, %s234_s4  ;;  %p240_p13 = scmp.lt.s32.totalorder %s234_s4, %s234_s4 }
  0x1d   :  { %p241_p0 = por %p240_p13, %p239_p12 }
  0x1f   :  { %p242_p1 = pnand %p241_p0, %p235_p11 }
  0x21   :  { %245 = shalt.err (!%p242_p1)
}
  0x22   :  { %s278_s0 = smov 64   ;;  %s279_s5 = smov 4  }
  0x23   :  { %33 = dma.hbm_to_vmem [thread:$0]  %s333_s1, 384, %s28_s24, [#allocation6], %s278_s0, %s278_s0, %s279_s5  }
  0x24   :  { %268 = dma.done.wait [#allocation3], 512  }
  0x25   :  { %269 = vsyncadd [#allocation3], 4294966784 }
  0x26   :  { %270 = dma.done.wait [#allocation6], 384  }
  0x27   :  { %271 = vsyncadd [#allocation6], 4294966912  ;;  %v199_v0 = vld [vmem:[#allocation5] sm:$0xff]   ;;  %v200_v1 = vld [vmem:[#allocation5 + $0x8] sm:$0xff]   ;;  %vm71_vm0 = vcmask 392192   ;;  %v149_v26 = vlaneseq  ;;  %s280_s1 = smov [#allocation7]  }
  0x28   :  { %182 = vmatprep.subr.bf16.mxu0 %v199_v0  ;;  %v41_v2 = vld [vmem:[#allocation2] sm:$0xff]  ;;  %v42_v3 = vld [vmem:[#allocation2 + $0x8] sm:$0xff]  ;;  %v201_v4 = vld [vmem:[#allocation5 + $0x10] sm:$0xff]   ;;  %s162_s8 = sshll.u32 %s280_s1, 4  ;;  %s163_s8 = int_to_ptr.vmem [resolvable:$true] %s162_s8 }
  0x29   :  { %183 = vmatpush3.bf16.msra.mxu0 %v199_v0  ;;  %v45_v5 = vpack.c.bf16 %v42_v3, %v41_v2  ;;  %v43_v6 = vld [vmem:[#allocation2 + $0x10] sm:$0xff]  ;;  %v44_v7 = vld [vmem:[#allocation2 + $0x18] sm:$0xff]  ;;  %v150_v31 = vshrl.u32 %v149_v26, 7  ;;  %s246_s9 = scalar_lea.vmem %s163_s8, 128  ;;  %p251_p3 = scmp.lt.s32.totalorder %s163_s8, %s163_s8 }
  0x2a   :  { %184 = vmatprep.subr.bf16.mxu0 %v200_v1  ;;  %v46_v8 = vpack.c.bf16 %v44_v7, %v43_v6  ;;  %p247_p2 = scmp.ne.s32.totalorder %s163_s8, %s246_s9  ;;  %p252_p4 = scmp.lt.s32.totalorder %s246_s9, %s246_s9 }
  0x2b   :  { %188 = vmatprep.mubr.msk.bf16.mxu0 %vm71_vm0, %v45_v5  ;;  %vm152_vm1 = vcmp.eq.s32.totalorder %v150_v31, 1  ;;  %vm151_vm2 = vcmp.eq.s32.totalorder %v150_v31, 0 }
  0x2c   :  { %p253_p5 = por %p252_p4, %p251_p3 }
  0x2d   :  { %185 = vmatpush3.bf16.msra.mxu0 %v200_v1 }
  0x2e   :  { %186 = vmatprep.subr.bf16.mxu0 %v201_v4  ;;  %p254_p6 = pnand %p253_p5, %p247_p2 }
  0x31   :  { %187 = vmatpush3.bf16.msra.mxu0 %v201_v4 }
  0x34   :  { %189 = vmatmul.mubr.msk.bf16.vlgmr.msra.gmra.mrb[0].mxu0 %vm71_vm0, %v46_v8 }
 0x107   :  { %v190_v9 = vpop.f32.mrb[0].mxu0 }
 0x108   :  { %v112_v10 = vpop.f32.mrb[1].mxu0  ;;  %v138_v16 = vmul.f32 %v190_v9, %v190_v9 }
 0x109   :  { %v191_v11 = vpop.f32.mrb[2].mxu0  ;;  %v136_v13 = vmul.f32 %v112_v10, %v112_v10 }
 0x10a   :  { %v115_v12 = vpop.f32.mrb[3].mxu0  ;;  %v139_v19 = vmul.f32 %v191_v11, %v191_v11 }
 0x10b   :  { %v127_v14 = vadd.f32 %v115_v12, %v112_v10  ;;  %v137_v15 = vmul.f32 %v115_v12, %v115_v12 }
 0x10d   :  { %v128_v17 = vadd.f32 %v190_v9, %v127_v14  ;;  %v140_v18 = vadd.f32 %v137_v15, %v136_v13 }
 0x10f   :  { %v129_v20 = vadd.f32 %v191_v11, %v128_v17  ;;  %v141_v21 = vadd.f32 %v140_v18, %v138_v16 }
 0x111   :  { %v130_v22 = vrot.slane %v129_v20, 4  ;;  %v142_v23 = vadd.f32 %v141_v21, %v139_v19 }
 0x113   :  { %v131_v24 = vadd.f32 %v130_v22, %v129_v20  ;;  %v143_v25 = vrot.slane %v142_v23, 4 }
 0x115   :  { %v132_v27 = vrot.slane %v131_v24, 2  ;;  %v144_v28 = vadd.f32 %v143_v25, %v142_v23 }
 0x117   :  { %v133_v29 = vadd.f32 %v132_v27, %v131_v24  ;;  %v145_v30 = vrot.slane %v144_v28, 2 }
 0x119   :  { %v146_v32 = vadd.f32 %v145_v30, %v144_v28  ;;  %v134_v33 = vrot.slane %v133_v29, 1 }
 0x11b   :  { %v147_v34 = vrot.slane %v146_v32, 1  ;;  %v135_v36 = vadd.f32 %v134_v33, %v133_v29 }
 0x11d   :  { %v148_v35 = vadd.f32 %v147_v34, %v146_v32 }
 0x11f   :  { %v153_v37 = vsel %vm152_vm1, %v148_v35, 0.0 }
 0x120   :  { %v154_v38 = vsel %vm151_vm2, %v135_v36, %v153_v37 }
 0x121   :  { %155 = vst [vmem:[#allocation7] sm:$0xff] %v154_v38 }
 0x122   :  { %257 = shalt.err (!%p254_p6)
}
 0x123   :  { %s258_s12 = scalar_lea.hbm %s334_s2, 128 }
 0x124   :  { %p259_p7 = scmp.ne.s32.totalorder %s334_s2, %s258_s12  ;;  %p262_p8 = scmp.lt.u32.totalorder %s258_s12, %s334_s2 }
 0x126   :  { %p264_p9 = pnand %p262_p8, %p259_p7 }
 0x128   :  { %267 = shalt.err (!%p264_p9)
}
 0x129   :  { %165 = dma.vmem_to_hbm [thread:$0]  %s163_s8, 128, %s334_s2, [#allocation4]  }
 0x12a   :  { %272 = dma.done.wait [#allocation4], 128  }
 0x12b   :  { %273 = vsyncadd [#allocation4], 4294967168 }
 0x12c   :  { %169 = vsyncpa [#allocation3], 1 }
 0x12d   :  { %170 = vsyncpa [#allocation6], 1 }
 0x12e   :  { %171 = vsyncpa [#allocation4], 1 }

// kernel: tpu_custom_call.1
= control target key start
LH: loop header
LB: loop body
LE: loop exit
PB: predicated region body
PF: predicated region fallthrough
CT: control target
= control target key end

     0   :  { %7 = vsyncpa [#allocation3], 0  ;;  %s332_s0 = inlined_call_operand.hbm [shape: f32[32,48], index: 0, kind: input, shape index: {}]   ;;  %s333_s1 = inlined_call_operand.hbm [shape: bf16[48,128], index: 1, kind: input, shape index: {}]   ;;  %s334_s2 = inlined_call_operand.hbm [shape: f32[1,8,128], index: 2, kind: output, shape index: {}]  }
   0x1   :  { %8 = vsyncpa [#allocation6], 0 }
   0x2   :  { %9 = vsyncpa [#allocation4], 0  ;;  %s274_s9 = smov [#allocation2]   ;;  %s202_s13 = scalar_lea.hbm %s332_s0, 512 }
   0x3   :  { %s15_s10 = sshll.u32 %s274_s9, 4  ;;  %p203_p0 = scmp.ne.s32.totalorder %s332_s0, %s202_s13  ;;  %s16_s10 = int_to_ptr.vmem [resolvable:$true] %s15_s10 }
   0x4   :  { %p206_p1 = scmp.lt.u32.totalorder %s202_s13, %s332_s0 }
   0x6   :  { %p208_p2 = pnand %p206_p1, %p203_p0 }
   0x8   :  { %211 = shalt.err (!%p208_p2)
}
   0x9   :  { %s212_s18 = scalar_lea.vmem %s16_s10, 512  ;;  %p217_p4 = scmp.lt.s32.totalorder %s16_s10, %s16_s10 }
   0xa   :  { %p213_p3 = scmp.ne.s32.totalorder %s16_s10, %s212_s18  ;;  %p218_p5 = scmp.lt.s32.totalorder %s212_s18, %s212_s18 }
   0xc   :  { %p219_p6 = por %p218_p5, %p217_p4 }
   0xe   :  { %p220_p7 = pnand %p219_p6, %p213_p3 }
  0x10   :  { %223 = shalt.err (!%p220_p7)
}
  0x11   :  { %s275_s19 = smov 128   ;;  %s276_s20 = smov 8  }
  0x12   :  { %21 = dma.hbm_to_vmem [thread:$0]  %s332_s0, 512, %s16_s10, [#allocation3], %s275_s19, %s275_s19, %s276_s20  }
  0x13   :  { %s277_s23 = smov [#allocation5]   ;;  %s224_s27 = scalar_lea.hbm %s333_s1, 384 }
  0x14   :  { %s27_s24 = sshll.u32 %s277_s23, 4  ;;  %p225_p8 = scmp.ne.s32.totalorder %s333_s1, %s224_s27  ;;  %s28_s24 = int_to_ptr.vmem [resolvable:$true] %s27_s24 }
  0x15   :  { %p228_p9 = scmp.lt.u32.totalorder %s224_s27, %s333_s1 }
  0x17   :  { %p230_p10 = pnand %p228_p9, %p225_p8 }
  0x19   :  { %233 = shalt.err (!%p230_p10)
}
  0x1a   :  { %s234_s4 = scalar_lea.vmem %s28_s24, 384  ;;  %p239_p12 = scmp.lt.s32.totalorder %s28_s24, %s28_s24 }
  0x1b   :  { %p235_p11 = scmp.ne.s32.totalorder %s28_s24, %s234_s4  ;;  %p240_p13 = scmp.lt.s32.totalorder %s234_s4, %s234_s4 }
  0x1d   :  { %p241_p0 = por %p240_p13, %p239_p12 }
  0x1f   :  { %p242_p1 = pnand %p241_p0, %p235_p11 }
  0x21   :  { %245 = shalt.err (!%p242_p1)
}
  0x22   :  { %s278_s0 = smov 64   ;;  %s279_s5 = smov 4  }
  0x23   :  { %33 = dma.hbm_to_vmem [thread:$0]  %s333_s1, 384, %s28_s24, [#allocation6], %s278_s0, %s278_s0, %s279_s5  }
  0x24   :  { %268 = dma.done.wait [#allocation3], 512  }
  0x25   :  { %269 = vsyncadd [#allocation3], 4294966784 }
  0x26   :  { %270 = dma.done.wait [#allocation6], 384  }
  0x27   :  { %271 = vsyncadd [#allocation6], 4294966912  ;;  %v199_v0 = vld [vmem:[#allocation5] sm:$0xff]   ;;  %v200_v1 = vld [vmem:[#allocation5 + $0x8] sm:$0xff]   ;;  %vm71_vm0 = vcmask 392192   ;;  %v149_v26 = vlaneseq  ;;  %s280_s1 = smov [#allocation7]  }
  0x28   :  { %182 = vmatprep.subr.bf16.mxu0 %v199_v0  ;;  %v41_v2 = vld [vmem:[#allocation2] sm:$0xff]  ;;  %v42_v3 = vld [vmem:[#allocation2 + $0x8] sm:$0xff]  ;;  %v201_v4 = vld [vmem:[#allocation5 + $0x10] sm:$0xff]   ;;  %s162_s8 = sshll.u32 %s280_s1, 4  ;;  %s163_s8 = int_to_ptr.vmem [resolvable:$true] %s162_s8 }
  0x29   :  { %183 = vmatpush3.bf16.msra.mxu0 %v199_v0  ;;  %v45_v5 = vpack.c.bf16 %v42_v3, %v41_v2  ;;  %v43_v6 = vld [vmem:[#allocation2 + $0x10] sm:$0xff]  ;;  %v44_v7 = vld [vmem:[#allocation2 + $0x18] sm:$0xff]  ;;  %v150_v31 = vshrl.u32 %v149_v26, 7  ;;  %s246_s9 = scalar_lea.vmem %s163_s8, 128  ;;  %p251_p3 = scmp.lt.s32.totalorder %s163_s8, %s163_s8 }
  0x2a   :  { %184 = vmatprep.subr.bf16.mxu0 %v200_v1  ;;  %v46_v8 = vpack.c.bf16 %v44_v7, %v43_v6  ;;  %p247_p2 = scmp.ne.s32.totalorder %s163_s8, %s246_s9  ;;  %p252_p4 = scmp.lt.s32.totalorder %s246_s9, %s246_s9 }
  0x2b   :  { %188 = vmatprep.mubr.msk.bf16.mxu0 %vm71_vm0, %v45_v5  ;;  %vm152_vm1 = vcmp.eq.s32.totalorder %v150_v31, 1  ;;  %vm151_vm2 = vcmp.eq.s32.totalorder %v150_v31, 0 }
  0x2c   :  { %p253_p5 = por %p252_p4, %p251_p3 }
  0x2d   :  { %185 = vmatpush3.bf16.msra.mxu0 %v200_v1 }
  0x2e   :  { %186 = vmatprep.subr.bf16.mxu0 %v201_v4  ;;  %p254_p6 = pnand %p253_p5, %p247_p2 }
  0x31   :  { %187 = vmatpush3.bf16.msra.mxu0 %v201_v4 }
  0x34   :  { %189 = vmatmul.mubr.msk.bf16.vlgmr.msra.gmra.mrb[0].mxu0 %vm71_vm0, %v46_v8 }
 0x107   :  { %v190_v9 = vpop.f32.mrb[0].mxu0 }
 0x108   :  { %v112_v10 = vpop.f32.mrb[1].mxu0  ;;  %v138_v16 = vmul.f32 %v190_v9, %v190_v9 }
 0x109   :  { %v191_v11 = vpop.f32.mrb[2].mxu0  ;;  %v136_v13 = vmul.f32 %v112_v10, %v112_v10 }
 0x10a   :  { %v115_v12 = vpop.f32.mrb[3].mxu0  ;;  %v139_v19 = vmul.f32 %v191_v11, %v191_v11 }
 0x10b   :  { %v127_v14 = vadd.f32 %v115_v12, %v112_v10  ;;  %v137_v15 = vmul.f32 %v115_v12, %v115_v12 }
 0x10d   :  { %v128_v17 = vadd.f32 %v190_v9, %v127_v14  ;;  %v140_v18 = vadd.f32 %v137_v15, %v136_v13 }
 0x10f   :  { %v129_v20 = vadd.f32 %v191_v11, %v128_v17  ;;  %v141_v21 = vadd.f32 %v140_v18, %v138_v16 }
 0x111   :  { %v130_v22 = vrot.slane %v129_v20, 4  ;;  %v142_v23 = vadd.f32 %v141_v21, %v139_v19 }
 0x113   :  { %v131_v24 = vadd.f32 %v130_v22, %v129_v20  ;;  %v143_v25 = vrot.slane %v142_v23, 4 }
 0x115   :  { %v132_v27 = vrot.slane %v131_v24, 2  ;;  %v144_v28 = vadd.f32 %v143_v25, %v142_v23 }
 0x117   :  { %v133_v29 = vadd.f32 %v132_v27, %v131_v24  ;;  %v145_v30 = vrot.slane %v144_v28, 2 }
 0x119   :  { %v146_v32 = vadd.f32 %v145_v30, %v144_v28  ;;  %v134_v33 = vrot.slane %v133_v29, 1 }
 0x11b   :  { %v147_v34 = vrot.slane %v146_v32, 1  ;;  %v135_v36 = vadd.f32 %v134_v33, %v133_v29 }
 0x11d   :  { %v148_v35 = vadd.f32 %v147_v34, %v146_v32 }
 0x11f   :  { %v153_v37 = vsel %vm152_vm1, %v148_v35, 0.0 }
 0x120   :  { %v154_v38 = vsel %vm151_vm2, %v135_v36, %v153_v37 }
 0x121   :  { %155 = vst [vmem:[#allocation7] sm:$0xff] %v154_v38 }
 0x122   :  { %257 = shalt.err (!%p254_p6)
}
 0x123   :  { %s258_s12 = scalar_lea.hbm %s334_s2, 128 }
 0x124   :  { %p259_p7 = scmp.ne.s32.totalorder %s334_s2, %s258_s12  ;;  %p262_p8 = scmp.lt.u32.totalorder %s258_s12, %s334_s2 }
 0x126   :  { %p264_p9 = pnand %p262_p8, %p259_p7 }
 0x128   :  { %267 = shalt.err (!%p264_p9)
}
 0x129   :  { %165 = dma.vmem_to_hbm [thread:$0]  %s163_s8, 128, %s334_s2, [#allocation4]  }
 0x12a   :  { %272 = dma.done.wait [#allocation4], 128  }
 0x12b   :  { %273 = vsyncadd [#allocation4], 4294967168 }
 0x12c   :  { %169 = vsyncpa [#allocation3], 1 }
 0x12d   :  { %170 = vsyncpa [#allocation6], 1 }
 0x12e   :  { %171 = vsyncpa [#allocation4], 1 }

</bundles_post_ra>
